<compile_context>
chip_gen: v7x
topology: tpu7x:2x2x1
jax: 0.10.0
libtpu: 0.0.40
codegen_flags: <defaults>
</compile_context>

<pallas_src>
import functools

import jax
import jax.numpy as jnp
from jax import lax
from jax.experimental import pallas as pl
from jax.experimental.pallas import tpu as pltpu


def _round_up(v, m):
    return ((v + m - 1) // m) * m


def rnn_kernel(x_ref, whx_ref, b_ref, whh_ref, wph_ref, bph_ref, out_ref,
               xp_ref, h_ref, *, seq_len):
    block_t, block_b, D = x_ref.shape
    t_idx = pl.program_id(1)
    n_t = pl.num_programs(1)

    @pl.when(t_idx == 0)
    def _():
        h_ref[...] = jnp.zeros_like(h_ref)

    # Hoisted input projection for this time chunk: one GEMM over block_t
    # timesteps with the folded bias (b_hx + b_hh) added once, written to a
    # VMEM scratch so the serial recurrence reads one row-block per step.
    # (reshape is layout-free because block_b is a multiple of 8 and x is f32.)
    x_all = x_ref[...].reshape(block_t * block_b, D)
    xp_ref[...] = (jnp.dot(x_all, whx_ref[...], preferred_element_type=jnp.float32)
                   + b_ref[...])

    t0 = t_idx * block_t
    needs_mask = (seq_len % block_t) != 0   # static Python bool

    def step(s, h):
        row = pl.multiple_of(s * block_b, 8)
        pre = xp_ref[pl.ds(row, block_b), :] + jnp.dot(
            h.astype(whh_ref.dtype), whh_ref[...],
            preferred_element_type=jnp.float32)
        h_new = jnp.tanh(pre)
        if needs_mask:
            # Padded tail timesteps leave h unchanged (keeps the grid static).
            h_new = jnp.where(t0 + s < seq_len, h_new, h)
        return h_new

    h = lax.fori_loop(0, block_t, step, h_ref[...],
                      unroll=block_t if block_t <= 8 else 8)
    h_ref[...] = h

    @pl.when(t_idx == n_t - 1)
    def _():
        # Output projection + softmax over the class axis (padded classes carry
        # a -1e30 bias so exp() underflows to exactly 0 for them).
        o = (jnp.dot(h.astype(wph_ref.dtype), wph_ref[...],
                     preferred_element_type=jnp.float32) + bph_ref[...])
        o = o - jnp.max(o, axis=1, keepdims=True)
        e = jnp.exp(o)
        s = jnp.sum(e, axis=1, keepdims=True)
        inv = pl.reciprocal(s, approx=True)
        inv = inv * (2.0 - s * inv)          # one Newton step -> f32 accuracy
        out_ref[...] = (e * inv).astype(out_ref.dtype)


def _physical_vmem_bytes():
    try:
        return int(pltpu.get_tpu_info().vmem_capacity_bytes)
    except Exception:
        return 64 * 1024 * 1024   # conservative: v7x per-TensorCore VMEM


def vanilla_rnn_forward(x, params, *, block_b=None, block_t=None,
                        matmul_dtype=jnp.bfloat16):
    """x: (B, T, D) float32. Returns softmax probabilities (B, O)."""
    whx, bhx, whh, bhh, wph, bph = params
    B, T, D = x.shape
    H = whx.shape[1]
    O = wph.shape[1]

    Hp = _round_up(H, 128)
    Op = _round_up(O, 128)
    Bp = _round_up(B, 8)

    # Batch tile: fill the MXU (<= 256 rows) but keep >= 2 tiles for large
    # batches so the "parallel" axis shards across both v7x TensorCores.
    if block_b is None:
        if Bp <= 128:
            block_b = Bp
        elif Bp <= 512:
            block_b = _round_up(pl.cdiv(Bp, 2), 8)
        else:
            block_b = 256
    Bp = _round_up(Bp, block_b)

    # Time chunk: bound the double-buffered x chunk + projection scratch to a
    # few MiB so VMEM stays feasible for long sequences.
    if block_t is None:
        per_step = block_b * (2 * D * 4 + Hp * 4)
        block_t = max(1, min(T, (4 * 1024 * 1024) // max(per_step, 1)))
    Tp = _round_up(T, block_t)

    # Time-major, zero-padded input at its true feature width D (no lane pad).
    x_tm = jnp.transpose(x, (1, 0, 2))
    x_tm = jnp.pad(x_tm, ((0, Tp - T), (0, Bp - B), (0, 0)))

    whx_p = jnp.pad(whx, ((0, 0), (0, Hp - H)))                          # f32
    b_p = jnp.pad(bhx + bhh, ((0, 0), (0, Hp - H)))                      # folded bias, f32
    whh_p = jnp.pad(whh, ((0, Hp - H), (0, Hp - H))).astype(matmul_dtype)
    wph_p = jnp.pad(wph, ((0, Hp - H), (0, Op - O))).astype(matmul_dtype)
    bph_p = jnp.pad(bph, ((0, 0), (0, Op - O)), constant_values=-1e30)   # f32

    grid = (Bp // block_b, Tp // block_t)

    wbytes = jnp.dtype(matmul_dtype).itemsize
    vmem_est = (2 * block_t * block_b * D * 4                       # x (double-buffered)
                + 2 * (D * Hp * 4 + Hp * Hp * wbytes + Hp * Op * wbytes)
                + 2 * (Hp + Op) * 4                                  # biases
                + 2 * block_b * Op * 4                               # output
                + block_t * block_b * Hp * 4                         # x_proj scratch
                + block_b * Hp * 4)                                  # h scratch
    vmem_limit = max(32 * 1024 * 1024,
                     min(int(vmem_est * 1.5) + (2 << 20),
                         int(_physical_vmem_bytes() * 0.75)))

    cost = pl.CostEstimate(
        flops=int(2 * Tp * Bp * (D * Hp + Hp * Hp) + 2 * Bp * Hp * Op),
        transcendentals=int(Tp * Bp * Hp + Bp * Op),
        bytes_accessed=int(x_tm.size * 4 + whx_p.size * 4 + b_p.size * 4
                           + whh_p.size * wbytes + wph_p.size * wbytes
                           + bph_p.size * 4 + Bp * Op * 4),
    )

    out = pl.pallas_call(
        functools.partial(rnn_kernel, seq_len=T),
        out_shape=jax.ShapeDtypeStruct((Bp, Op), jnp.float32),
        grid_spec=pltpu.PrefetchScalarGridSpec(
            num_scalar_prefetch=0,
            grid=grid,
            in_specs=[
                pl.BlockSpec((block_t, block_b, D), lambda i, t: (t, i, 0)),  # x chunk
                pl.BlockSpec((D, Hp), lambda i, t: (0, 0)),                   # Whx (f32)
                pl.BlockSpec((1, Hp), lambda i, t: (0, 0)),                   # b_hx + b_hh
                pl.BlockSpec((Hp, Hp), lambda i, t: (0, 0)),                  # Whh (bf16)
                pl.BlockSpec((Hp, Op), lambda i, t: (0, 0)),                  # Wph (bf16)
                pl.BlockSpec((1, Op), lambda i, t: (0, 0)),                   # b_ph (-1e30 pad)
            ],
            out_specs=pl.BlockSpec((block_b, Op), lambda i, t: (i, 0)),
            scratch_shapes=[
                pltpu.VMEM((block_t * block_b, Hp), jnp.float32),  # per-chunk x projection
                pltpu.VMEM((block_b, Hp), jnp.float32),            # hidden-state carry
            ],
        ),
        compiler_params=pltpu.CompilerParams(
            dimension_semantics=("parallel", "arbitrary"),
            vmem_limit_bytes=vmem_limit,
        ),
        cost_estimate=cost,
    )(x_tm, whx_p, b_p, whh_p, wph_p, bph_p)

    return out[:B, :O]


def init_params(key, input_dim, hidden_dim, output_dim):
    """Deterministic init mimicking nn.Linear (uniform +/- 1/sqrt(fan_in)).

    Weights are stored transposed (in_features, out_features) so the kernel
    computes x @ W; biases stored as (1, out) for broadcasting.
    """
    ks = jax.random.split(key, 6)

    def lin(kw, kb, fan_in, fan_out):
        bound = 1.0 / jnp.sqrt(fan_in)
        w = jax.random.uniform(kw, (fan_in, fan_out), jnp.float32, -bound, bound)
        b = jax.random.uniform(kb, (1, fan_out), jnp.float32, -bound, bound)
        return w, b

    whx, bhx = lin(ks[0], ks[1], input_dim, hidden_dim)
    whh, bhh = lin(ks[2], ks[3], hidden_dim, hidden_dim)
    wph, bph = lin(ks[4], ks[5], hidden_dim, output_dim)
    return whx, bhx, whh, bhh, wph, bph


def reference_forward(x, params, matmul_dtype=jnp.float32):
    """Pure-JAX reference of the PyTorch forward.

    With matmul_dtype=jnp.bfloat16 it applies the same matmul-input casts as
    the kernel (f32 accumulation), for a precision-matched comparison.
    """
    whx, bhx, whh, bhh, wph, bph = params
    B, T, D = x.shape
    whh_c = whh.astype(matmul_dtype)
    wph_c = wph.astype(matmul_dtype)
    h = jnp.zeros((B, whx.shape[1]), jnp.float32)
    for t in range(T):
        pre = (jnp.dot(x[:, t, :], whx, preferred_element_type=jnp.float32) + bhx
               + jnp.dot(h.astype(matmul_dtype), whh_c,
                         preferred_element_type=jnp.float32) + bhh)
        h = jnp.tanh(pre)
    o = jnp.dot(h.astype(matmul_dtype), wph_c,
                preferred_element_type=jnp.float32) + bph
    return jax.nn.softmax(o, axis=1)


if __name__ == "__main__":
    # Small shapes consistent with the module: batch=2, seq=8, input_dim=4,
    # hidden_dim=32, output_dim=10.
    B, T, D, H, O = 2, 8, 4, 32, 10

    key = jax.random.PRNGKey(0)
    kx, kp = jax.random.split(key)
    x = jax.random.normal(kx, (B, T, D), jnp.float32)
    params = init_params(kp, D, H, O)

    y = vanilla_rnn_forward(x, params)          # bf16 MXU inputs, f32 everything else
    y = jax.block_until_ready(y)

    y_ref_matched = reference_forward(x, params, matmul_dtype=jnp.bfloat16)
    y_ref_f32 = reference_forward(x, params, matmul_dtype=jnp.float32)

    assert y.shape == (B, O)
    assert jnp.allclose(jnp.sum(y, axis=1), 1.0, atol=1e-4)
    assert jnp.allclose(y, y_ref_matched, atol=2e-4, rtol=2e-4)   # matched precision
    assert jnp.allclose(y, y_ref_f32, atol=2e-2)                  # full-f32 PyTorch semantics

    print("KERNEL_OK")
</pallas_src>

<mosaic_0001>
module attributes {stable_mosaic.version = 11 : i64} {
  func.func @rnn_kernel(%arg0: i32, %arg1: i32, %arg2: memref<8x8x4xf32, #tpu.memory_space<vmem>>, %arg3: memref<4x128xf32, #tpu.memory_space<vmem>>, %arg4: memref<1x128xf32, #tpu.memory_space<vmem>>, %arg5: memref<128x128xbf16, #tpu.memory_space<vmem>>, %arg6: memref<128x128xbf16, #tpu.memory_space<vmem>>, %arg7: memref<1x128xf32, #tpu.memory_space<vmem>>, %arg8: memref<8x128xf32, #tpu.memory_space<vmem>>, %arg9: memref<64x128xf32, #tpu.memory_space<vmem>>, %arg10: memref<8x128xf32, #tpu.memory_space<vmem>>) attributes {dimension_semantics = [#tpu.dimension_semantics<parallel>, #tpu.dimension_semantics<arbitrary>], iteration_bounds = array<i64: 1, 1>, scalar_prefetch = 0 : i64, scratch_operands = 2 : i64, tpu.core_type = #tpu.core_type<tc>, window_params = [{transform_indices = @transform_0, window_bounds = array<i64: 8, 8, 4>}, {pipeline_mode = #tpu.pipeline_mode<synchronous>, transform_indices = @transform_1, window_bounds = array<i64: 4, 128>}, {pipeline_mode = #tpu.pipeline_mode<synchronous>, transform_indices = @transform_2, window_bounds = array<i64: 1, 128>}, {pipeline_mode = #tpu.pipeline_mode<synchronous>, transform_indices = @transform_3, window_bounds = array<i64: 128, 128>}, {pipeline_mode = #tpu.pipeline_mode<synchronous>, transform_indices = @transform_4, window_bounds = array<i64: 128, 128>}, {pipeline_mode = #tpu.pipeline_mode<synchronous>, transform_indices = @transform_5, window_bounds = array<i64: 1, 128>}, {transform_indices = @transform_6, window_bounds = array<i64: 8, 128>}]} {
    %c0_i32 = arith.constant 0 : i32
    %0 = arith.cmpi eq, %arg1, %c0_i32 : i32
    %1 = arith.extui %0 : i1 to i32
    %c0_i32_0 = arith.constant 0 : i32
    %2 = arith.cmpi ne, %1, %c0_i32_0 : i32
    scf.if %2 {
      %cst_56 = arith.constant 0.000000e+00 : f32
      %88 = vector.broadcast %cst_56 : f32 to vector<8x128xf32>
      %c0_57 = arith.constant 0 : index
      %c0_58 = arith.constant 0 : index
      %89 = vector.load %arg10[%c0_57, %c0_58] : memref<8x128xf32, #tpu.memory_space<vmem>>, vector<8x128xf32>
      tpu.vector_store %arg10[%c0_57, %c0_58], %88 {strides = array<i32>} : memref<8x128xf32, #tpu.memory_space<vmem>>, vector<8x128xf32>,
    } else {
    }
    %c0 = arith.constant 0 : index
    %c0_1 = arith.constant 0 : index
    %c0_2 = arith.constant 0 : index
    %3 = vector.load %arg2[%c0, %c0_1, %c0_2] : memref<8x8x4xf32, #tpu.memory_space<vmem>>, vector<8x8x4xf32>
    %4 = vector.shape_cast %3 : vector<8x8x4xf32> to vector<64x4xf32>
    %c0_3 = arith.constant 0 : index
    %c0_4 = arith.constant 0 : index
    %5 = vector.load %arg3[%c0_3, %c0_4] : memref<4x128xf32, #tpu.memory_space<vmem>>, vector<4x128xf32>
    %cst = arith.constant dense<0.000000e+00> : vector<64x128xf32>
    %6 = tpu.matmul %4, %5, %cst {dimension_numbers = #tpu.dot_dimension_numbers<[1], [0], [0], [1], [0, 0, 1, 1], [], []>} : vector<64x4xf32>, vector<4x128xf32>, vector<64x128xf32> -> vector<64x128xf32>
    %c0_5 = arith.constant 0 : index
    %c0_6 = arith.constant 0 : index
    %7 = vector.load %arg4[%c0_5, %c0_6] : memref<1x128xf32, #tpu.memory_space<vmem>>, vector<1x128xf32>
    %8 = vector.broadcast %7 : vector<1x128xf32> to vector<64x128xf32>
    %9 = arith.addf %6, %8 : vector<64x128xf32>
    %c0_7 = arith.constant 0 : index
    %c0_8 = arith.constant 0 : index
    %10 = vector.load %arg9[%c0_7, %c0_8] : memref<64x128xf32, #tpu.memory_space<vmem>>, vector<64x128xf32>
    tpu.vector_store %arg9[%c0_7, %c0_8], %9 {strides = array<i32>} : memref<64x128xf32, #tpu.memory_space<vmem>>, vector<64x128xf32>,
    %c0_9 = arith.constant 0 : index
    %c0_10 = arith.constant 0 : index
    %11 = vector.load %arg10[%c0_9, %c0_10] : memref<8x128xf32, #tpu.memory_space<vmem>>, vector<8x128xf32>
    %c0_i32_11 = arith.constant 0 : i32
    %c8_i32 = arith.constant 8 : i32
    %12 = arith.muli %c0_i32_11, %c8_i32 : i32
    %13 = tpu.assume_multiple %12, 8 : i32
    %14 = arith.index_cast %13 : i32 to index
    %c0_12 = arith.constant 0 : index
    %15 = vector.load %arg9[%14, %c0_12] : memref<64x128xf32, #tpu.memory_space<vmem>>, vector<8x128xf32>
    %16 = arith.truncf %11 : vector<8x128xf32> to vector<8x128xbf16>
    %c0_13 = arith.constant 0 : index
    %c0_14 = arith.constant 0 : index
    %17 = vector.load %arg5[%c0_13, %c0_14] : memref<128x128xbf16, #tpu.memory_space<vmem>>, vector<128x128xbf16>
    %cst_15 = arith.constant dense<0.000000e+00> : vector<8x128xf32>
    %18 = tpu.matmul %16, %17, %cst_15 {dimension_numbers = #tpu.dot_dimension_numbers<[1], [0], [0], [1], [0, 0, 1, 1], [], []>} : vector<8x128xbf16>, vector<128x128xbf16>, vector<8x128xf32> -> vector<8x128xf32>
    %19 = arith.addf %15, %18 : vector<8x128xf32>
    %20 = math.tanh %19 : vector<8x128xf32>
    %c1_i32 = arith.constant 1 : i32
    %c8_i32_16 = arith.constant 8 : i32
    %21 = arith.muli %c1_i32, %c8_i32_16 : i32
    %22 = tpu.assume_multiple %21, 8 : i32
    %23 = arith.index_cast %22 : i32 to index
    %c0_17 = arith.constant 0 : index
    %24 = vector.load %arg9[%23, %c0_17] : memref<64x128xf32, #tpu.memory_space<vmem>>, vector<8x128xf32>
    %25 = arith.truncf %20 : vector<8x128xf32> to vector<8x128xbf16>
    %c0_18 = arith.constant 0 : index
    %c0_19 = arith.constant 0 : index
    %26 = vector.load %arg5[%c0_18, %c0_19] : memref<128x128xbf16, #tpu.memory_space<vmem>>, vector<128x128xbf16>
    %cst_20 = arith.constant dense<0.000000e+00> : vector<8x128xf32>
    %27 = tpu.matmul %25, %26, %cst_20 {dimension_numbers = #tpu.dot_dimension_numbers<[1], [0], [0], [1], [0, 0, 1, 1], [], []>} : vector<8x128xbf16>, vector<128x128xbf16>, vector<8x128xf32> -> vector<8x128xf32>
    %28 = arith.addf %24, %27 : vector<8x128xf32>
    %29 = math.tanh %28 : vector<8x128xf32>
    %c2_i32 = arith.constant 2 : i32
    %c8_i32_21 = arith.constant 8 : i32
    %30 = arith.muli %c2_i32, %c8_i32_21 : i32
    %31 = tpu.assume_multiple %30, 8 : i32
    %32 = arith.index_cast %31 : i32 to index
    %c0_22 = arith.constant 0 : index
    %33 = vector.load %arg9[%32, %c0_22] : memref<64x128xf32, #tpu.memory_space<vmem>>, vector<8x128xf32>
    %34 = arith.truncf %29 : vector<8x128xf32> to vector<8x128xbf16>
    %c0_23 = arith.constant 0 : index
    %c0_24 = arith.constant 0 : index
    %35 = vector.load %arg5[%c0_23, %c0_24] : memref<128x128xbf16, #tpu.memory_space<vmem>>, vector<128x128xbf16>
    %cst_25 = arith.constant dense<0.000000e+00> : vector<8x128xf32>
    %36 = tpu.matmul %34, %35, %cst_25 {dimension_numbers = #tpu.dot_dimension_numbers<[1], [0], [0], [1], [0, 0, 1, 1], [], []>} : vector<8x128xbf16>, vector<128x128xbf16>, vector<8x128xf32> -> vector<8x128xf32>
    %37 = arith.addf %33, %36 : vector<8x128xf32>
    %38 = math.tanh %37 : vector<8x128xf32>
    %c3_i32 = arith.constant 3 : i32
    %c8_i32_26 = arith.constant 8 : i32
    %39 = arith.muli %c3_i32, %c8_i32_26 : i32
    %40 = tpu.assume_multiple %39, 8 : i32
    %41 = arith.index_cast %40 : i32 to index
    %c0_27 = arith.constant 0 : index
    %42 = vector.load %arg9[%41, %c0_27] : memref<64x128xf32, #tpu.memory_space<vmem>>, vector<8x128xf32>
    %43 = arith.truncf %38 : vector<8x128xf32> to vector<8x128xbf16>
    %c0_28 = arith.constant 0 : index
    %c0_29 = arith.constant 0 : index
    %44 = vector.load %arg5[%c0_28, %c0_29] : memref<128x128xbf16, #tpu.memory_space<vmem>>, vector<128x128xbf16>
    %cst_30 = arith.constant dense<0.000000e+00> : vector<8x128xf32>
    %45 = tpu.matmul %43, %44, %cst_30 {dimension_numbers = #tpu.dot_dimension_numbers<[1], [0], [0], [1], [0, 0, 1, 1], [], []>} : vector<8x128xbf16>, vector<128x128xbf16>, vector<8x128xf32> -> vector<8x128xf32>
    %46 = arith.addf %42, %45 : vector<8x128xf32>
    %47 = math.tanh %46 : vector<8x128xf32>
    %c4_i32 = arith.constant 4 : i32
    %c8_i32_31 = arith.constant 8 : i32
    %48 = arith.muli %c4_i32, %c8_i32_31 : i32
    %49 = tpu.assume_multiple %48, 8 : i32
    %50 = arith.index_cast %49 : i32 to index
    %c0_32 = arith.constant 0 : index
    %51 = vector.load %arg9[%50, %c0_32] : memref<64x128xf32, #tpu.memory_space<vmem>>, vector<8x128xf32>
    %52 = arith.truncf %47 : vector<8x128xf32> to vector<8x128xbf16>
    %c0_33 = arith.constant 0 : index
    %c0_34 = arith.constant 0 : index
    %53 = vector.load %arg5[%c0_33, %c0_34] : memref<128x128xbf16, #tpu.memory_space<vmem>>, vector<128x128xbf16>
    %cst_35 = arith.constant dense<0.000000e+00> : vector<8x128xf32>
    %54 = tpu.matmul %52, %53, %cst_35 {dimension_numbers = #tpu.dot_dimension_numbers<[1], [0], [0], [1], [0, 0, 1, 1], [], []>} : vector<8x128xbf16>, vector<128x128xbf16>, vector<8x128xf32> -> vector<8x128xf32>
    %55 = arith.addf %51, %54 : vector<8x128xf32>
    %56 = math.tanh %55 : vector<8x128xf32>
    %c5_i32 = arith.constant 5 : i32
    %c8_i32_36 = arith.constant 8 : i32
    %57 = arith.muli %c5_i32, %c8_i32_36 : i32
    %58 = tpu.assume_multiple %57, 8 : i32
    %59 = arith.index_cast %58 : i32 to index
    %c0_37 = arith.constant 0 : index
    %60 = vector.load %arg9[%59, %c0_37] : memref<64x128xf32, #tpu.memory_space<vmem>>, vector<8x128xf32>
    %61 = arith.truncf %56 : vector<8x128xf32> to vector<8x128xbf16>
    %c0_38 = arith.constant 0 : index
    %c0_39 = arith.constant 0 : index
    %62 = vector.load %arg5[%c0_38, %c0_39] : memref<128x128xbf16, #tpu.memory_space<vmem>>, vector<128x128xbf16>
    %cst_40 = arith.constant dense<0.000000e+00> : vector<8x128xf32>
    %63 = tpu.matmul %61, %62, %cst_40 {dimension_numbers = #tpu.dot_dimension_numbers<[1], [0], [0], [1], [0, 0, 1, 1], [], []>} : vector<8x128xbf16>, vector<128x128xbf16>, vector<8x128xf32> -> vector<8x128xf32>
    %64 = arith.addf %60, %63 : vector<8x128xf32>
    %65 = math.tanh %64 : vector<8x128xf32>
    %c6_i32 = arith.constant 6 : i32
    %c8_i32_41 = arith.constant 8 : i32
    %66 = arith.muli %c6_i32, %c8_i32_41 : i32
    %67 = tpu.assume_multiple %66, 8 : i32
    %68 = arith.index_cast %67 : i32 to index
    %c0_42 = arith.constant 0 : index
    %69 = vector.load %arg9[%68, %c0_42] : memref<64x128xf32, #tpu.memory_space<vmem>>, vector<8x128xf32>
    %70 = arith.truncf %65 : vector<8x128xf32> to vector<8x128xbf16>
    %c0_43 = arith.constant 0 : index
    %c0_44 = arith.constant 0 : index
    %71 = vector.load %arg5[%c0_43, %c0_44] : memref<128x128xbf16, #tpu.memory_space<vmem>>, vector<128x128xbf16>
    %cst_45 = arith.constant dense<0.000000e+00> : vector<8x128xf32>
    %72 = tpu.matmul %70, %71, %cst_45 {dimension_numbers = #tpu.dot_dimension_numbers<[1], [0], [0], [1], [0, 0, 1, 1], [], []>} : vector<8x128xbf16>, vector<128x128xbf16>, vector<8x128xf32> -> vector<8x128xf32>
    %73 = arith.addf %69, %72 : vector<8x128xf32>
    %74 = math.tanh %73 : vector<8x128xf32>
    %c7_i32 = arith.constant 7 : i32
    %c8_i32_46 = arith.constant 8 : i32
    %75 = arith.muli %c7_i32, %c8_i32_46 : i32
    %76 = tpu.assume_multiple %75, 8 : i32
    %77 = arith.index_cast %76 : i32 to index
    %c0_47 = arith.constant 0 : index
    %78 = vector.load %arg9[%77, %c0_47] : memref<64x128xf32, #tpu.memory_space<vmem>>, vector<8x128xf32>
    %79 = arith.truncf %74 : vector<8x128xf32> to vector<8x128xbf16>
    %c0_48 = arith.constant 0 : index
    %c0_49 = arith.constant 0 : index
    %80 = vector.load %arg5[%c0_48, %c0_49] : memref<128x128xbf16, #tpu.memory_space<vmem>>, vector<128x128xbf16>
    %cst_50 = arith.constant dense<0.000000e+00> : vector<8x128xf32>
    %81 = tpu.matmul %79, %80, %cst_50 {dimension_numbers = #tpu.dot_dimension_numbers<[1], [0], [0], [1], [0, 0, 1, 1], [], []>} : vector<8x128xbf16>, vector<128x128xbf16>, vector<8x128xf32> -> vector<8x128xf32>
    %82 = arith.addf %78, %81 : vector<8x128xf32>
    %83 = math.tanh %82 : vector<8x128xf32>
    %c8_i32_51 = arith.constant 8 : i32
    %c0_52 = arith.constant 0 : index
    %c0_53 = arith.constant 0 : index
    %84 = vector.load %arg10[%c0_52, %c0_53] : memref<8x128xf32, #tpu.memory_space<vmem>>, vector<8x128xf32>
    tpu.vector_store %arg10[%c0_52, %c0_53], %83 {strides = array<i32>} : memref<8x128xf32, #tpu.memory_space<vmem>>, vector<8x128xf32>,
    %c0_i32_54 = arith.constant 0 : i32
    %85 = arith.cmpi eq, %arg1, %c0_i32_54 : i32
    %86 = arith.extui %85 : i1 to i32
    %c0_i32_55 = arith.constant 0 : i32
    %87 = arith.cmpi ne, %86, %c0_i32_55 : i32
    scf.if %87 {
      %88 = arith.truncf %83 : vector<8x128xf32> to vector<8x128xbf16>
      %c0_56 = arith.constant 0 : index
      %c0_57 = arith.constant 0 : index
      %89 = vector.load %arg6[%c0_56, %c0_57] : memref<128x128xbf16, #tpu.memory_space<vmem>>, vector<128x128xbf16>
      %cst_58 = arith.constant dense<0.000000e+00> : vector<8x128xf32>
      %90 = tpu.matmul %88, %89, %cst_58 {dimension_numbers = #tpu.dot_dimension_numbers<[1], [0], [0], [1], [0, 0, 1, 1], [], []>} : vector<8x128xbf16>, vector<128x128xbf16>, vector<8x128xf32> -> vector<8x128xf32>
      %c0_59 = arith.constant 0 : index
      %c0_60 = arith.constant 0 : index
      %91 = vector.load %arg7[%c0_59, %c0_60] : memref<1x128xf32, #tpu.memory_space<vmem>>, vector<1x128xf32>
      %92 = vector.broadcast %91 : vector<1x128xf32> to vector<8x128xf32>
      %93 = arith.addf %90, %92 : vector<8x128xf32>
      %cst_61 = arith.constant dense<0xFF800000> : vector<8xf32>
      %94 = vector.multi_reduction <maximumf>, %93, %cst_61 [1] : vector<8x128xf32> to vector<8xf32>
      %95 = vector.shape_cast %94 : vector<8xf32> to vector<8x1xf32>
      %96 = vector.broadcast %95 : vector<8x1xf32> to vector<8x128xf32>
      %97 = arith.subf %93, %96 : vector<8x128xf32>
      %98 = math.exp %97 : vector<8x128xf32>
      %cst_62 = arith.constant dense<0.000000e+00> : vector<8xf32>
      %99 = vector.multi_reduction <add>, %98, %cst_62 [1] : vector<8x128xf32> to vector<8xf32>
      %100 = vector.shape_cast %99 : vector<8xf32> to vector<8x1xf32>
      %101 = tpu.reciprocal %100 {approx = true} : vector<8x1xf32> -> vector<8x1xf32>
      %102 = arith.mulf %100, %101 : vector<8x1xf32>
      %cst_63 = arith.constant 2.000000e+00 : f32
      %103 = vector.broadcast %cst_63 : f32 to vector<8x1xf32>
      %104 = arith.subf %103, %102 : vector<8x1xf32>
      %105 = arith.mulf %101, %104 : vector<8x1xf32>
      %106 = vector.broadcast %105 : vector<8x1xf32> to vector<8x128xf32>
      %107 = arith.mulf %98, %106 : vector<8x128xf32>
      %c0_64 = arith.constant 0 : index
      %c0_65 = arith.constant 0 : index
      %108 = vector.load %arg8[%c0_64, %c0_65] : memref<8x128xf32, #tpu.memory_space<vmem>>, vector<8x128xf32>
      tpu.vector_store %arg8[%c0_64, %c0_65], %107 {strides = array<i32>} : memref<8x128xf32, #tpu.memory_space<vmem>>, vector<8x128xf32>,
    } else {
    }
    return
  }
  func.func @transform_0(%arg0: i32, %arg1: i32) -> (i32, i32, i32) {
    %c0_i32 = arith.constant 0 : i32
    %c0_i32_0 = arith.constant 0 : i32
    return %arg1, %arg0, %c0_i32 : i32, i32, i32
  }
  func.func @transform_1(%arg0: i32, %arg1: i32) -> (i32, i32) {
    %c0_i32 = arith.constant 0 : i32
    %c0_i32_0 = arith.constant 0 : i32
    %c0_i32_1 = arith.constant 0 : i32
    return %c0_i32, %c0_i32_0 : i32, i32
  }
  func.func @transform_2(%arg0: i32, %arg1: i32) -> (i32, i32) {
    %c0_i32 = arith.constant 0 : i32
    %c0_i32_0 = arith.constant 0 : i32
    %c0_i32_1 = arith.constant 0 : i32
    return %c0_i32, %c0_i32_0 : i32, i32
  }
  func.func @transform_3(%arg0: i32, %arg1: i32) -> (i32, i32) {
    %c0_i32 = arith.constant 0 : i32
    %c0_i32_0 = arith.constant 0 : i32
    %c0_i32_1 = arith.constant 0 : i32
    return %c0_i32, %c0_i32_0 : i32, i32
  }
  func.func @transform_4(%arg0: i32, %arg1: i32) -> (i32, i32) {
    %c0_i32 = arith.constant 0 : i32
    %c0_i32_0 = arith.constant 0 : i32
    %c0_i32_1 = arith.constant 0 : i32
    return %c0_i32, %c0_i32_0 : i32, i32
  }
  func.func @transform_5(%arg0: i32, %arg1: i32) -> (i32, i32) {
    %c0_i32 = arith.constant 0 : i32
    %c0_i32_0 = arith.constant 0 : i32
    %c0_i32_1 = arith.constant 0 : i32
    return %c0_i32, %c0_i32_0 : i32, i32
  }
  func.func @transform_6(%arg0: i32, %arg1: i32) -> (i32, i32) {
    %c0_i32 = arith.constant 0 : i32
    %c0_i32_0 = arith.constant 0 : i32
    return %arg0, %c0_i32 : i32, i32
  }
}

</mosaic_0001>

<bundles_post_ra>
// kernel: tpu_custom_call.1
= control target key start
LH: loop header
LB: loop body
LE: loop exit
PB: predicated region body
PF: predicated region fallthrough
CT: control target
= control target key end

     0   :  { %11 = vsyncpa [#allocation5], 0  ;;  %s1495_s0 = inlined_call_operand.vmem [shape: f32[8,8,4], index: 0, kind: input, shape index: {}]   ;;  %s1496_s1 = inlined_call_operand.vmem [shape: f32[4,128], index: 1, kind: input, shape index: {}]   ;;  %s1497_s2 = inlined_call_operand.vmem [shape: f32[1,128], index: 2, kind: input, shape index: {}]   ;;  %s1498_s3 = inlined_call_operand.vmem [shape: bf16[128,128], index: 3, kind: input, shape index: {}]   ;;  %s1499_s4 = inlined_call_operand.hbm [shape: bf16[128,128], index: 4, kind: input, shape index: {}]   ;;  %s1500_s5 = inlined_call_operand.vmem [shape: f32[1,128], index: 5, kind: input, shape index: {}]   ;;  %s1501_s6 = inlined_call_operand.hbm [shape: f32[8,128], index: 6, kind: output, shape index: {}]  }
   0x1   :  { %12 = vsyncpa [#allocation6], 0  ;;  %s1172_s21 = smov [#allocation4]   ;;  %s1124_s25 = scalar_lea.hbm %s1499_s4, 1024 }
   0x2   :  { %s26_s22 = sshll.u32 %s1172_s21, 4  ;;  %p1125_p0 = scmp.ne.s32.totalorder %s1499_s4, %s1124_s25  ;;  %s27_s22 = int_to_ptr.vmem [resolvable:$true] %s26_s22 }
   0x3   :  { %p1128_p1 = scmp.lt.u32.totalorder %s1124_s25, %s1499_s4 }
   0x5   :  { %p1130_p2 = pnand %p1128_p1, %p1125_p0 }
   0x7   :  { %1133 = shalt.err (!%p1130_p2)
}
   0x8   :  { %s1134_s30 = scalar_lea.vmem %s27_s22, 1024  ;;  %p1139_p4 = scmp.lt.s32.totalorder %s27_s22, %s27_s22 }
   0x9   :  { %p1135_p3 = scmp.ne.s32.totalorder %s27_s22, %s1134_s30  ;;  %p1140_p5 = scmp.lt.s32.totalorder %s1134_s30, %s1134_s30 }
   0xb   :  { %p1141_p6 = por %p1140_p5, %p1139_p4 }
   0xd   :  { %p1142_p7 = pnand %p1141_p6, %p1135_p3 }
   0xf   :  { %1145 = shalt.err (!%p1142_p7)
}
  0x10   :  { %s1173_s7 = smov 64   ;;  %s1174_s8 = smov 4  }
  0x11   :  { %32 = dma.hbm_to_vmem [thread:$0]  %s1499_s4, 1024, %s27_s22, [#allocation5], %s1173_s7, %s1173_s7, %s1174_s8  }
  0x12   :  { %1168 = dma.done.wait [#allocation5], 1024  }
  0x13   :  { %1169 = vsyncadd [#allocation5], 4294966272  ;;  %v1175_v0 = vmov 0.0   ;;  %vm1176_vm0 = vmmov 0   ;;  %v1232_v1 = vld [vmem:[%s1498_s3] sm:$0xff]   ;;  %v1238_v2 = vld [vmem:[%s1498_s3 + $0x8] sm:$0xff]  }
  0x14   :  { %901 = vmatprep.subr.bf16.mxu1 %v1175_v0  ;;  %917 = vmatprep.mubr.msk.bf16.mxu1 %vm1176_vm0, %v1175_v0  ;;  %vm85_vm1 = vcmask 1043456   ;;  %vm60_vm2 = vcmask 31744   ;;  %v1245_v3 = vld [vmem:[%s1498_s3 + $0x10] sm:$0xff]   ;;  %v52_v4 = vld [vmem:[%s1496_s1] sm:$0xf]  ;;  %v45_v6 = vld [vmem:[%s1495_s0 + $0x8] sm:$0xff] }
  0x15   :  { %902 = vmatpush3.bf16.msra.mxu1 %v1232_v1  ;;  %v44_v5 = vld [vmem:[%s1495_s0] sm:$0xff]  ;;  %v1260_v7 = vld [vmem:[%s1498_s3 + $0x18] sm:$0xff]   ;;  %887 = vmatprep.subr.msk.mxu0 %vm85_vm1, %v52_v4  ;;  %v1282_v9 = vld [vmem:[%s1498_s3 + $0x28] sm:$0xff]   ;;  %v1177_v12 = vmov 0.0|0.0   ;;  %s1178_s19 = smov [#allocation7]  }
  0x16   :  { %903 = vmatprep.subr.bf16.mxu1 %v1175_v0  ;;  %889 = vmatprep.mubr.msk.f32.mxu0 %vm60_vm2, %v44_v5  ;;  %v1273_v8 = vld [vmem:[%s1498_s3 + $0x20] sm:$0xff]   ;;  %v1291_v10 = vld [vmem:[%s1498_s3 + $0x30] sm:$0xff]   ;;  %v1300_v11 = vld [vmem:[%s1498_s3 + $0x38] sm:$0xff]   ;;  %s761_s20 = sshll.u32 %s1178_s19, 4  ;;  %s762_s20 = int_to_ptr.vmem [resolvable:$true] %s761_s20 }
  0x17   :  { %888 = vmatpush3.msk.msra.mxu0 %vm85_vm1, %v52_v4  ;;  %v46_v13 = vld [vmem:[%s1495_s0 + $0x10] sm:$0xff]  ;;  %v47_v14 = vld [vmem:[%s1495_s0 + $0x18] sm:$0xff]  ;;  %v48_v15 = vld [vmem:[%s1495_s0 + $0x20] sm:$0xff]  ;;  %p1151_p9 = scmp.lt.s32.totalorder %s762_s20, %s762_s20 }
  0x18   :  { %890 = vmatmul.mubr.msk.f32.vlgmr.msra.gmra.mrb[0].mxu0 %vm60_vm2, %v45_v6  ;;  %921 = vmatprep.subr.bf16.mxu0 %v1175_v0  ;;  %v49_v16 = vld [vmem:[%s1495_s0 + $0x28] sm:$0xff]  ;;  %v50_v17 = vld [vmem:[%s1495_s0 + $0x30] sm:$0xff]  ;;  %v51_v18 = vld [vmem:[%s1495_s0 + $0x38] sm:$0xff] }
  0x19   :  { %904 = vmatpush3.bf16.msra.mxu1 %v1238_v2  ;;  %922 = vmatpush3.bf16.msra.mxu0 %v1232_v1  ;;  %v1360_v21 = vld [vmem:[%s1497_s2] ss:$0 sm:$0xff] }
  0x1a   :  { %905 = vmatprep.subr.bf16.mxu1 %v1175_v0  ;;  %923 = vmatprep.subr.bf16.mxu0 %v1175_v0 }
  0x1b   :  { %892 = vmatprep.mubr.msk.f32.mxu0 %vm60_vm2, %v46_v13 }
  0x1c   :  { %893 = vmatmul.mubr.msk.f32.gmra.mrb[2].mxu0 %vm60_vm2, %v47_v14 }
  0x1d   :  { %906 = vmatpush3.bf16.msra.mxu1 %v1245_v3  ;;  %924 = vmatpush3.bf16.msra.mxu0 %v1238_v2 }
  0x1e   :  { %907 = vmatprep.subr.bf16.mxu1 %v1175_v0  ;;  %925 = vmatprep.subr.bf16.mxu0 %v1175_v0 }
  0x1f   :  { %895 = vmatprep.mubr.msk.f32.mxu0 %vm60_vm2, %v48_v15 }
  0x20   :  { %896 = vmatmul.mubr.msk.f32.gmra.mrb[4].mxu0 %vm60_vm2, %v49_v16  ;;  %v1099_v16 = vld [vmem:[#allocation4 + $0x18] sm:$0xff]  }
  0x21   :  { %908 = vmatpush3.bf16.msra.mxu1 %v1260_v7  ;;  %926 = vmatpush3.bf16.msra.mxu0 %v1245_v3 }
  0x22   :  { %909 = vmatprep.subr.bf16.mxu1 %v1175_v0  ;;  %927 = vmatprep.subr.bf16.mxu0 %v1175_v0 }
  0x23   :  { %898 = vmatprep.mubr.msk.f32.mxu0 %vm60_vm2, %v50_v17 }
  0x24   :  { %899 = vmatmul.mubr.msk.f32.gmra.mrb[6].mxu0 %vm60_vm2, %v51_v18 }
  0x25   :  { %910 = vmatpush3.bf16.msra.mxu1 %v1273_v8  ;;  %928 = vmatpush3.bf16.msra.mxu0 %v1260_v7 }
  0x26   :  { %911 = vmatprep.subr.bf16.mxu1 %v1175_v0  ;;  %929 = vmatprep.subr.bf16.mxu0 %v1175_v0 }
  0x27   :  { %937 = vmatprep.mubr.msk.bf16.mxu0 %vm1176_vm0, %v1175_v0 }
  0x29   :  { %912 = vmatpush3.bf16.msra.mxu1 %v1282_v9  ;;  %930 = vmatpush3.bf16.msra.mxu0 %v1273_v8 }
  0x2a   :  { %913 = vmatprep.subr.bf16.mxu1 %v1175_v0  ;;  %931 = vmatprep.subr.bf16.mxu0 %v1175_v0 }
  0x2d   :  { %914 = vmatpush3.bf16.msra.mxu1 %v1291_v10  ;;  %932 = vmatpush3.bf16.msra.mxu0 %v1282_v9 }
  0x2e   :  { %915 = vmatprep.subr.bf16.mxu1 %v1175_v0  ;;  %933 = vmatprep.subr.bf16.mxu0 %v1175_v0 }
  0x31   :  { %916 = vmatpush3.bf16.msra.mxu1 %v1300_v11  ;;  %934 = vmatpush3.bf16.msra.mxu0 %v1291_v10 }
  0x32   :  { %941 = vmatprep.subr.bf16.mxu1 %v1175_v0  ;;  %935 = vmatprep.subr.bf16.mxu0 %v1175_v0 }
  0x34   :  { %918 = vmatmul.mubr.bf16.vlgmr.msra.gmra.mrb[0].mxu1 %v1177_v12 }
  0x35   :  { %942 = vmatpush3.bf16.msra.mxu1 %v1232_v1  ;;  %957 = vmatprep.mubr.msk.bf16.mxu1 %vm1176_vm0, %v1175_v0 }
  0x36   :  { %943 = vmatprep.subr.bf16.mxu1 %v1175_v0  ;;  %936 = vmatpush3.bf16.msra.mxu0 %v1300_v11 }
  0x37   :  { %961 = vmatprep.subr.bf16.mxu0 %v1175_v0 }
  0x39   :  { %944 = vmatpush3.bf16.msra.mxu1 %v1238_v2 }
  0x3a   :  { %945 = vmatprep.subr.bf16.mxu1 %v1175_v0 }
  0x3d   :  { %946 = vmatpush3.bf16.msra.mxu1 %v1245_v3 }
  0x3e   :  { %947 = vmatprep.subr.bf16.mxu1 %v1175_v0 }
  0x41   :  { %948 = vmatpush3.bf16.msra.mxu1 %v1260_v7 }
  0x42   :  { %949 = vmatprep.subr.bf16.mxu1 %v1175_v0 }
  0x45   :  { %950 = vmatpush3.bf16.msra.mxu1 %v1273_v8 }
  0x46   :  { %951 = vmatprep.subr.bf16.mxu1 %v1175_v0 }
  0x49   :  { %952 = vmatpush3.bf16.msra.mxu1 %v1282_v9 }
  0x4a   :  { %953 = vmatprep.subr.bf16.mxu1 %v1175_v0 }
  0x4d   :  { %954 = vmatpush3.bf16.msra.mxu1 %v1291_v10 }
  0x4e   :  { %955 = vmatprep.subr.bf16.mxu1 %v1175_v0 }
  0x51   :  { %956 = vmatpush3.bf16.msra.mxu1 %v1300_v11 }
  0x52   :  { %981 = vmatprep.subr.bf16.mxu1 %v1175_v0 }
  0xeb   :  { %v891_v19 = vpop.f32.mrb[0].mxu0 }
  0xec   :  { %v155_v20 = vpop.f32.mrb[1].mxu0  ;;  %v161_v36 = vadd.f32 %v891_v19, %v1360_v21 }
  0xed   :  { %v156_v22 = vadd.f32 %v1360_v21, %v155_v20 }
  0xef   :  { %v894_v30 = vpop.f32.mrb[2].mxu0 }
  0xf0   :  { %v165_v31 = vpop.f32.mrb[3].mxu0  ;;  %v171_v52 = vadd.f32 %v894_v30, %v1360_v21 }
  0xf1   :  { %v166_v44 = vadd.f32 %v1360_v21, %v165_v31 }
  0xf3   :  { %v1381_v32 = vpop.f32.mrb[4].mxu0 }
  0xf4   :  { %v1383_v33 = vpop.f32.mrb[5].mxu0 }
  0xf5   :  { %v176_v60 = vadd.f32 %v1360_v21, %v1383_v33 }
  0xf7   :  { %v1385_v34 = vpop.f32.mrb[6].mxu0 }
  0xf8   :  { %v1387_v35 = vpop.f32.mrb[7].mxu0  ;;  %v191_v30 = vadd.f32 %v1385_v34, %v1360_v21 }
  0xf9   :  { %v186_v17 = vadd.f32 %v1360_v21, %v1387_v35 }
 0x107   :  { %v303_v23 = vpop.f32.mrb[0].mxu1 }
 0x108   :  { %v309_v24 = vadd.f32 %v303_v23, %v156_v22  ;;  %v919_v25 = vpop.f32.mrb[1].mxu1 }
 0x109   :  { %v306_v26 = vpop.f32.mrb[2].mxu1 }
 0x10a   :  { %1104 = vtanh.f32 %v309_v24  ;;  %v920_v27 = vpop.f32.mrb[3].mxu1  ;;  %v1100_v26 = vld [vmem:[#allocation4 + $0x20] sm:$0xff]  }
 0x10b   :  { %v1101_v27 = vld [vmem:[#allocation4 + $0x28] sm:$0xff]  }
 0x114   :  { %v1105_v28 = vpop.eup %1104 }
 0x115   :  { %v313_v29 = vpack.c.bf16 %v1105_v28, %v1105_v28  ;;  %v1102_v28 = vld [vmem:[#allocation4 + $0x30] sm:$0xff]  }
 0x117   :  { %938 = vmatmul.mubr.bf16.vlgmr.msra.gmra.mrb[8].mxu0 %v313_v29  ;;  %v1103_v29 = vld [vmem:[#allocation4 + $0x38] sm:$0xff]  }
 0x118   :  { %962 = vmatpush3.bf16.msra.mxu0 %v1232_v1  ;;  %977 = vmatprep.mubr.msk.bf16.mxu0 %vm1176_vm0, %v1175_v0 }
 0x119   :  { %963 = vmatprep.subr.bf16.mxu0 %v1175_v0 }
 0x11c   :  { %964 = vmatpush3.bf16.msra.mxu0 %v1238_v2 }
 0x11d   :  { %965 = vmatprep.subr.bf16.mxu0 %v1175_v0 }
 0x120   :  { %966 = vmatpush3.bf16.msra.mxu0 %v1245_v3 }
 0x121   :  { %967 = vmatprep.subr.bf16.mxu0 %v1175_v0 }
 0x124   :  { %968 = vmatpush3.bf16.msra.mxu0 %v1260_v7 }
 0x125   :  { %969 = vmatprep.subr.bf16.mxu0 %v1175_v0 }
 0x128   :  { %970 = vmatpush3.bf16.msra.mxu0 %v1273_v8 }
 0x129   :  { %971 = vmatprep.subr.bf16.mxu0 %v1175_v0 }
 0x12c   :  { %972 = vmatpush3.bf16.msra.mxu0 %v1282_v9 }
 0x12d   :  { %973 = vmatprep.subr.bf16.mxu0 %v1175_v0 }
 0x130   :  { %974 = vmatpush3.bf16.msra.mxu0 %v1291_v10 }
 0x131   :  { %975 = vmatprep.subr.bf16.mxu0 %v1175_v0 }
 0x134   :  { %976 = vmatpush3.bf16.msra.mxu0 %v1300_v11 }
 0x135   :  { %1001 = vmatprep.subr.bf16.mxu0 %v1175_v0 }
 0x1ea   :  { %v348_v37 = vpop.f32.mrb[8].mxu0 }
 0x1eb   :  { %v354_v38 = vadd.f32 %v348_v37, %v161_v36  ;;  %v939_v39 = vpop.f32.mrb[9].mxu0 }
 0x1ec   :  { %v351_v40 = vpop.f32.mrb[10].mxu0  ;;  %v788_v39 = vld [vmem:[%s1500_s5] ss:$0 sm:$0xff]  ;;  %s1146_s5 = scalar_lea.vmem %s762_s20, 128 }
 0x1ed   :  { %1106 = vtanh.f32 %v354_v38  ;;  %v940_v41 = vpop.f32.mrb[11].mxu0  ;;  %p1147_p8 = scmp.ne.s32.totalorder %s762_s20, %s1146_s5  ;;  %p1152_p10 = scmp.lt.s32.totalorder %s1146_s5, %s1146_s5 }
 0x1ef   :  { %p1153_p11 = por %p1152_p10, %p1151_p9 }
 0x1f1   :  { %p1154_p12 = pnand %p1153_p11, %p1147_p8 }
 0x1f7   :  { %v1107_v42 = vpop.eup %1106 }
 0x1f8   :  { %v358_v43 = vpack.c.bf16 %v1107_v42, %v1107_v42 }
 0x1fa   :  { %958 = vmatmul.mubr.bf16.vlgmr.msra.gmra.mrb[4].mxu1 %v358_v43 }
 0x1fb   :  { %982 = vmatpush3.bf16.msra.mxu1 %v1232_v1  ;;  %997 = vmatprep.mubr.msk.bf16.mxu1 %vm1176_vm0, %v1175_v0 }
 0x1fc   :  { %983 = vmatprep.subr.bf16.mxu1 %v1175_v0 }
 0x1ff   :  { %984 = vmatpush3.bf16.msra.mxu1 %v1238_v2 }
 0x200   :  { %985 = vmatprep.subr.bf16.mxu1 %v1175_v0 }
 0x203   :  { %986 = vmatpush3.bf16.msra.mxu1 %v1245_v3 }
 0x204   :  { %987 = vmatprep.subr.bf16.mxu1 %v1175_v0 }
 0x207   :  { %988 = vmatpush3.bf16.msra.mxu1 %v1260_v7 }
 0x208   :  { %989 = vmatprep.subr.bf16.mxu1 %v1175_v0 }
 0x20b   :  { %990 = vmatpush3.bf16.msra.mxu1 %v1273_v8 }
 0x20c   :  { %991 = vmatprep.subr.bf16.mxu1 %v1175_v0 }
 0x20f   :  { %992 = vmatpush3.bf16.msra.mxu1 %v1282_v9 }
 0x210   :  { %993 = vmatprep.subr.bf16.mxu1 %v1175_v0 }
 0x213   :  { %994 = vmatpush3.bf16.msra.mxu1 %v1291_v10 }
 0x214   :  { %995 = vmatprep.subr.bf16.mxu1 %v1175_v0 }
 0x217   :  { %996 = vmatpush3.bf16.msra.mxu1 %v1300_v11 }
 0x218   :  { %1021 = vmatprep.subr.bf16.mxu1 %v1175_v0 }
 0x2cd   :  { %v393_v45 = vpop.f32.mrb[4].mxu1 }
 0x2ce   :  { %v399_v46 = vadd.f32 %v393_v45, %v166_v44  ;;  %v959_v47 = vpop.f32.mrb[5].mxu1 }
 0x2cf   :  { %v396_v48 = vpop.f32.mrb[6].mxu1 }
 0x2d0   :  { %1108 = vtanh.f32 %v399_v46  ;;  %v960_v49 = vpop.f32.mrb[7].mxu1 }
 0x2da   :  { %v1109_v50 = vpop.eup %1108 }
 0x2db   :  { %v403_v51 = vpack.c.bf16 %v1109_v50, %v1109_v50 }
 0x2dd   :  { %978 = vmatmul.mubr.bf16.vlgmr.msra.gmra.mrb[12].mxu0 %v403_v51 }
 0x2de   :  { %1002 = vmatpush3.bf16.msra.mxu0 %v1232_v1  ;;  %1017 = vmatprep.mubr.msk.bf16.mxu0 %vm1176_vm0, %v1175_v0 }
 0x2df   :  { %1003 = vmatprep.subr.bf16.mxu0 %v1175_v0 }
 0x2e2   :  { %1004 = vmatpush3.bf16.msra.mxu0 %v1238_v2 }
 0x2e3   :  { %1005 = vmatprep.subr.bf16.mxu0 %v1175_v0 }
 0x2e6   :  { %1006 = vmatpush3.bf16.msra.mxu0 %v1245_v3 }
 0x2e7   :  { %1007 = vmatprep.subr.bf16.mxu0 %v1175_v0 }
 0x2ea   :  { %1008 = vmatpush3.bf16.msra.mxu0 %v1260_v7 }
 0x2eb   :  { %1009 = vmatprep.subr.bf16.mxu0 %v1175_v0 }
 0x2ee   :  { %1010 = vmatpush3.bf16.msra.mxu0 %v1273_v8 }
 0x2ef   :  { %1011 = vmatprep.subr.bf16.mxu0 %v1175_v0 }
 0x2f2   :  { %1012 = vmatpush3.bf16.msra.mxu0 %v1282_v9 }
 0x2f3   :  { %1013 = vmatprep.subr.bf16.mxu0 %v1175_v0 }
 0x2f6   :  { %1014 = vmatpush3.bf16.msra.mxu0 %v1291_v10 }
 0x2f7   :  { %1015 = vmatprep.subr.bf16.mxu0 %v1175_v0 }
 0x2fa   :  { %1016 = vmatpush3.bf16.msra.mxu0 %v1300_v11 }
 0x2fb   :  { %1041 = vmatprep.subr.bf16.mxu0 %v1175_v0 }
 0x3b0   :  { %v438_v53 = vpop.f32.mrb[12].mxu0 }
 0x3b1   :  { %v444_v54 = vadd.f32 %v438_v53, %v171_v52  ;;  %v979_v55 = vpop.f32.mrb[13].mxu0 }
 0x3b2   :  { %v441_v56 = vpop.f32.mrb[14].mxu0 }
 0x3b3   :  { %1110 = vtanh.f32 %v444_v54  ;;  %v980_v57 = vpop.f32.mrb[15].mxu0 }
 0x3bd   :  { %v1111_v58 = vpop.eup %1110 }
 0x3be   :  { %v448_v59 = vpack.c.bf16 %v1111_v58, %v1111_v58 }
 0x3c0   :  { %998 = vmatmul.mubr.bf16.vlgmr.msra.gmra.mrb[8].mxu1 %v448_v59 }
 0x3c1   :  { %1022 = vmatpush3.bf16.msra.mxu1 %v1232_v1  ;;  %1037 = vmatprep.mubr.msk.bf16.mxu1 %vm1176_vm0, %v1175_v0 }
 0x3c2   :  { %1023 = vmatprep.subr.bf16.mxu1 %v1175_v0 }
 0x3c5   :  { %1024 = vmatpush3.bf16.msra.mxu1 %v1238_v2 }
 0x3c6   :  { %1025 = vmatprep.subr.bf16.mxu1 %v1175_v0 }
 0x3c9   :  { %1026 = vmatpush3.bf16.msra.mxu1 %v1245_v3 }
 0x3ca   :  { %1027 = vmatprep.subr.bf16.mxu1 %v1175_v0 }
 0x3cd   :  { %1028 = vmatpush3.bf16.msra.mxu1 %v1260_v7 }
 0x3ce   :  { %1029 = vmatprep.subr.bf16.mxu1 %v1175_v0 }
 0x3d1   :  { %1030 = vmatpush3.bf16.msra.mxu1 %v1273_v8 }
 0x3d2   :  { %1031 = vmatprep.subr.bf16.mxu1 %v1175_v0 }
 0x3d5   :  { %1032 = vmatpush3.bf16.msra.mxu1 %v1282_v9 }
 0x3d6   :  { %1033 = vmatprep.subr.bf16.mxu1 %v1175_v0 }
 0x3d9   :  { %1034 = vmatpush3.bf16.msra.mxu1 %v1291_v10 }
 0x3da   :  { %1035 = vmatprep.subr.bf16.mxu1 %v1175_v0 }
 0x3dd   :  { %1036 = vmatpush3.bf16.msra.mxu1 %v1300_v11 }
 0x3de   :  { %1061 = vmatprep.subr.bf16.mxu1 %v1175_v0 }
 0x493   :  { %v483_v61 = vpop.f32.mrb[8].mxu1 }
 0x494   :  { %v489_v62 = vadd.f32 %v483_v61, %v176_v60  ;;  %v999_v63 = vpop.f32.mrb[9].mxu1 }
 0x495   :  { %v486_v4 = vpop.f32.mrb[10].mxu1 }
 0x496   :  { %1112 = vtanh.f32 %v489_v62  ;;  %v1000_v5 = vpop.f32.mrb[11].mxu1 }
 0x4a0   :  { %v1113_v6 = vpop.eup %1112 }
 0x4a1   :  { %v493_v12 = vpack.c.bf16 %v1113_v6, %v1113_v6 }
 0x4a3   :  { %1018 = vmatmul.mubr.bf16.vlgmr.msra.gmra.mrb[16].mxu0 %v493_v12 }
 0x4a4   :  { %1042 = vmatpush3.bf16.msra.mxu0 %v1232_v1  ;;  %1057 = vmatprep.mubr.msk.bf16.mxu0 %vm1176_vm0, %v1175_v0  ;;  %v181_v1 = vadd.f32 %v1381_v32, %v1360_v21 }
 0x4a5   :  { %1043 = vmatprep.subr.bf16.mxu0 %v1175_v0 }
 0x4a8   :  { %1044 = vmatpush3.bf16.msra.mxu0 %v1238_v2 }
 0x4a9   :  { %1045 = vmatprep.subr.bf16.mxu0 %v1175_v0 }
 0x4ac   :  { %1046 = vmatpush3.bf16.msra.mxu0 %v1245_v3 }
 0x4ad   :  { %1047 = vmatprep.subr.bf16.mxu0 %v1175_v0 }
 0x4b0   :  { %1048 = vmatpush3.bf16.msra.mxu0 %v1260_v7 }
 0x4b1   :  { %1049 = vmatprep.subr.bf16.mxu0 %v1175_v0 }
 0x4b4   :  { %1050 = vmatpush3.bf16.msra.mxu0 %v1273_v8 }
 0x4b5   :  { %1051 = vmatprep.subr.bf16.mxu0 %v1175_v0 }
 0x4b8   :  { %1052 = vmatpush3.bf16.msra.mxu0 %v1282_v9  ;;  %v1096_v9 = vld [vmem:[#allocation4] sm:$0xff]  }
 0x4b9   :  { %1053 = vmatprep.subr.bf16.mxu0 %v1175_v0 }
 0x4bc   :  { %1054 = vmatpush3.bf16.msra.mxu0 %v1291_v10  ;;  %v1097_v10 = vld [vmem:[#allocation4 + $0x8] sm:$0xff]  }
 0x4bd   :  { %1055 = vmatprep.subr.bf16.mxu0 %v1175_v0 }
 0x4c0   :  { %1056 = vmatpush3.bf16.msra.mxu0 %v1300_v11  ;;  %v1098_v11 = vld [vmem:[#allocation4 + $0x10] sm:$0xff]  }
 0x576   :  { %v528_v2 = vpop.f32.mrb[16].mxu0 }
 0x577   :  { %v534_v3 = vadd.f32 %v528_v2, %v181_v1  ;;  %v1019_v7 = vpop.f32.mrb[17].mxu0 }
 0x578   :  { %v531_v13 = vpop.f32.mrb[18].mxu0 }
 0x579   :  { %1114 = vtanh.f32 %v534_v3  ;;  %v1020_v8 = vpop.f32.mrb[19].mxu0 }
 0x583   :  { %v1115_v14 = vpop.eup %1114 }
 0x584   :  { %v538_v15 = vpack.c.bf16 %v1115_v14, %v1115_v14 }
 0x586   :  { %1038 = vmatmul.mubr.bf16.vlgmr.msra.gmra.mrb[12].mxu1 %v538_v15 }
 0x587   :  { %1077 = vmatprep.mubr.msk.bf16.mxu1 %vm1176_vm0, %v1175_v0  ;;  %1062 = vmatpush3.bf16.msra.mxu1 %v1096_v9 }
 0x588   :  { %1063 = vmatprep.subr.bf16.mxu1 %v1175_v0 }
 0x58b   :  { %1064 = vmatpush3.bf16.msra.mxu1 %v1097_v10 }
 0x58c   :  { %1065 = vmatprep.subr.bf16.mxu1 %v1175_v0 }
 0x58f   :  { %1066 = vmatpush3.bf16.msra.mxu1 %v1098_v11 }
 0x590   :  { %1067 = vmatprep.subr.bf16.mxu1 %v1175_v0 }
 0x593   :  { %1068 = vmatpush3.bf16.msra.mxu1 %v1099_v16 }
 0x594   :  { %1069 = vmatprep.subr.bf16.mxu1 %v1175_v0 }
 0x597   :  { %1070 = vmatpush3.bf16.msra.mxu1 %v1100_v26 }
 0x598   :  { %1071 = vmatprep.subr.bf16.mxu1 %v1175_v0 }
 0x59b   :  { %1072 = vmatpush3.bf16.msra.mxu1 %v1101_v27 }
 0x59c   :  { %1073 = vmatprep.subr.bf16.mxu1 %v1175_v0 }
 0x59f   :  { %1074 = vmatpush3.bf16.msra.mxu1 %v1102_v28 }
 0x5a0   :  { %1075 = vmatprep.subr.bf16.mxu1 %v1175_v0 }
 0x5a3   :  { %1076 = vmatpush3.bf16.msra.mxu1 %v1103_v29 }
 0x659   :  { %v573_v18 = vpop.f32.mrb[12].mxu1 }
 0x65a   :  { %v579_v19 = vadd.f32 %v573_v18, %v186_v17  ;;  %v1039_v20 = vpop.f32.mrb[13].mxu1 }
 0x65b   :  { %v576_v22 = vpop.f32.mrb[14].mxu1 }
 0x65c   :  { %1116 = vtanh.f32 %v579_v19  ;;  %v1040_v23 = vpop.f32.mrb[15].mxu1 }
 0x666   :  { %v1117_v24 = vpop.eup %1116 }
 0x667   :  { %v583_v25 = vpack.c.bf16 %v1117_v24, %v1117_v24 }
 0x669   :  { %1058 = vmatmul.mubr.bf16.vlgmr.msra.gmra.mrb[20].mxu0 %v583_v25 }
 0x73c   :  { %v618_v31 = vpop.f32.mrb[20].mxu0 }
 0x73d   :  { %v624_v32 = vadd.f32 %v618_v31, %v191_v30  ;;  %v1059_v33 = vpop.f32.mrb[21].mxu0 }
 0x73e   :  { %v621_v35 = vpop.f32.mrb[22].mxu0 }
 0x73f   :  { %1118 = vtanh.f32 %v624_v32  ;;  %v1060_v36 = vpop.f32.mrb[23].mxu0 }
 0x749   :  { %v1119_v37 = vpop.eup %1118 }
 0x74a   :  { %v630_v38 = vpack.c.bf16 %v1119_v37, %v1119_v37 }
 0x74c   :  { %1078 = vmatmul.mubr.bf16.vlgmr.msra.gmra.mrb[16].mxu1 %v630_v38 }
 0x81f   :  { %v736_v40 = vpop.f32.mrb[16].mxu1 }
 0x820   :  { %v737_v0 = vadd.f32 %v788_v39, %v736_v40  ;;  %v1079_v41 = vpop.f32.mrb[17].mxu1 }
 0x821   :  { %v739_v42 = vpop.f32.mrb[18].mxu1 }
 0x822   :  { %742 = vmax.xlane.f32.xlu0 %v737_v0  ;;  %v1080_v43 = vpop.f32.mrb[19].mxu1 }
 0x8af   :  { %v743_v21 = vpop.xlane.xlu0 %742 }
 0x8b0   :  { %v744_v34 = vsub.f32 %v737_v0, %v743_v21 }
 0x8b2   :  { %v745_v44 = vmul.f32 1.442695, %v744_v34 }
 0x8b4   :  { %1120 = vpow2.f32 %v745_v44 }
 0x8be   :  { %v1121_v45 = vpop.eup %1120 }
 0x8bf   :  { %747 = vadd.xlane.f32.xlu0 %v1121_v45 }
 0x94c   :  { %v748_v46 = vpop.xlane.xlu0 %747 }
 0x94d   :  { %1122 = vrcp.f32 %v748_v46 }
 0x957   :  { %v1123_v47 = vpop.eup %1122 }
 0x958   :  { %v750_v48 = vmul.f32 %v1123_v47, %v748_v46 }
 0x95a   :  { %v751_v49 = vsub.f32 2.0, %v750_v48 }
 0x95c   :  { %v752_v50 = vmul.f32 %v1123_v47, %v751_v49 }
 0x95e   :  { %v753_v51 = vmul.f32 %v1121_v45, %v752_v50 }
 0x960   :  { %754 = vst [vmem:[#allocation7] sm:$0xff] %v753_v51 }
 0x961   :  { %1157 = shalt.err (!%p1154_p12)
}
 0x962   :  { %s1158_s23 = scalar_lea.hbm %s1501_s6, 128 }
 0x963   :  { %p1159_p13 = scmp.ne.s32.totalorder %s1501_s6, %s1158_s23  ;;  %p1162_p0 = scmp.lt.u32.totalorder %s1158_s23, %s1501_s6 }
 0x965   :  { %p1164_p1 = pnand %p1162_p0, %p1159_p13 }
 0x967   :  { %1167 = shalt.err (!%p1164_p1)
}
 0x968   :  { %764 = dma.vmem_to_hbm [thread:$0]  %s762_s20, 128, %s1501_s6, [#allocation6]  }
 0x969   :  { %1170 = dma.done.wait [#allocation6], 128  }
 0x96a   :  { %1171 = vsyncadd [#allocation6], 4294967168 }
 0x96b   :  { %768 = vsyncpa [#allocation5], 1 }
 0x96c   :  { %769 = vsyncpa [#allocation6], 1 }

</bundles_post_ra>
